<compile_context>
chip_gen: v7x
topology: tpu7x:2x2x1
jax: 0.10.0
libtpu: 0.0.40
codegen_flags: <defaults>
</compile_context>

<pallas_src>
import functools

import jax
import jax.numpy as jnp
from jax.experimental import pallas as pl
from jax.experimental.pallas import tpu as pltpu


def _round_up(x, m):
    return (x + m - 1) // m * m


def _vmem_budget_bytes():
    """Usable VMEM budget (bytes), generation-aware with a safe fallback."""
    cap = 64 * 2**20  # conservative fallback: fits every generation (v7x = 64 MiB)
    try:
        info = pltpu.get_tpu_info()
        cap = int(getattr(info, "vmem_capacity_bytes", cap))
    except Exception:
        pass
    return max(16 * 2**20, cap * 3 // 4)


def _pick_tile_k(cin_p, cout_p, it_in, budget):
    """Largest multiple-of-128 divisor of cin_p whose double-buffered weight
    chunk stays under ~1/3 of the VMEM budget."""
    units = cin_p // 128
    cap_units = max(1, (budget // 3) // (2 * 128 * cout_p * it_in))
    best = 1
    for d in range(1, units + 1):
        if units % d == 0 and d <= cap_units:
            best = d
    return best * 128


def mlp_block_kernel(x_ref, w_ref, b_ref, g_ref, bt_ref, o_ref, acc_ref, *,
                     cout_valid, cout_padded):
    k = pl.program_id(1)

    @pl.when(k == 0)
    def _():
        acc_ref[...] = jnp.zeros_like(acc_ref)

    # fc (partial-K contribution): accumulate in f32 on the MXU.
    acc_ref[...] += jnp.dot(x_ref[...], w_ref[...],
                            preferred_element_type=jnp.float32)

    @pl.when(k == pl.num_programs(1) - 1)
    def _():
        y = acc_ref[...] + b_ref[...].astype(jnp.float32)      # (tm, cout_p)

        # LayerNorm over the true feature count (two-pass: mean, then variance
        # of the centered values; padded columns masked to zero so they do not
        # contribute to the centered sum of squares).
        inv_c = jnp.float32(1.0 / cout_valid)
        mean = jnp.sum(y, axis=-1, keepdims=True) * inv_c
        d = y - mean
        if cout_valid != cout_padded:
            col = jax.lax.broadcasted_iota(jnp.int32, d.shape, d.ndim - 1)
            d = jnp.where(col < cout_valid, d, 0.0)
        var = jnp.sum(d * d, axis=-1, keepdims=True) * inv_c
        yn = d * jax.lax.rsqrt(var + 1e-5)   # eps matches nn.LayerNorm default
        yn = yn * g_ref[...].astype(jnp.float32) + bt_ref[...].astype(jnp.float32)

        # ReLU
        o_ref[...] = jnp.maximum(yn, 0.0).astype(o_ref.dtype)


def mlp_block(x, w_t, b, gamma, beta, *, matmul_dtype=jnp.bfloat16,
              tile_m_cap=1024):
    """x: [*, Cin] -> [*, Cout].  w_t: [Cin, Cout] (transposed nn.Linear weight).

    matmul_dtype: dtype of the MXU operands (default bf16; accumulation is
                  always f32, LayerNorm numerics are computed in f32).
    """
    orig_shape = x.shape
    cin = orig_shape[-1]
    cout = w_t.shape[1]
    out_dtype = x.dtype

    x2 = x.reshape(-1, cin)
    n = x2.shape[0]

    cdt = jnp.dtype(matmul_dtype) if matmul_dtype is not None else jnp.dtype(x2.dtype)
    it_in = cdt.itemsize
    it_out = jnp.dtype(out_dtype).itemsize

    # Lane-dense feature dims (multiples of 128). Only materialize padded
    # copies when the dims are not already aligned.
    cin_p = _round_up(cin, 128)
    cout_p = _round_up(cout, 128)

    if cin_p == cin:
        x_in = x2.astype(cdt)
    else:
        x_in = jnp.zeros((n, cin_p), cdt).at[:, :cin].set(x2.astype(cdt))
    if cin_p == cin and cout_p == cout:
        w_in = w_t.astype(cdt)
    else:
        w_in = jnp.zeros((cin_p, cout_p), cdt).at[:cin, :cout].set(w_t.astype(cdt))
    b_in = jnp.zeros((1, cout_p), jnp.float32).at[0, :cout].set(b.astype(jnp.float32))
    g_in = jnp.zeros((1, cout_p), jnp.float32).at[0, :cout].set(gamma.astype(jnp.float32))
    bt_in = jnp.zeros((1, cout_p), jnp.float32).at[0, :cout].set(beta.astype(jnp.float32))

    # --- Generation-aware tiling -------------------------------------------
    budget = _vmem_budget_bytes()
    tile_k = _pick_tile_k(cin_p, cout_p, it_in, budget)
    grid_k = cin_p // tile_k

    # Per-tile VMEM: double-buffered weight chunk + params (fixed) and, per
    # row: double-buffered x chunk, double-buffered output tile, f32 acc.
    fixed = 2 * tile_k * cout_p * it_in + 8 * cout_p * 4
    per_row = 2 * tile_k * it_in + 2 * cout_p * it_out + cout_p * 4
    tile_m = max(8, (budget - fixed) // per_row)
    tile_m = min(tile_m, tile_m_cap, _round_up(n, 8))
    if n > 8:  # keep >= 2 row blocks so both v7x TensorCores get work
        tile_m = min(tile_m, _round_up(-(-n // 2), 8))
    tile_m = max(8, (tile_m // 8) * 8)
    grid_m = pl.cdiv(n, tile_m)

    vmem_limit = int(min(max(fixed + tile_m * per_row + (8 << 20), 32 << 20), budget))

    kernel = functools.partial(mlp_block_kernel, cout_valid=cout, cout_padded=cout_p)

    cost = pl.CostEstimate(
        flops=2 * n * cin_p * cout_p,
        transcendentals=n,  # one rsqrt per row
        bytes_accessed=(n * cin_p * it_in + cin_p * cout_p * it_in
                        + n * cout_p * it_out + 3 * cout_p * 4),
    )

    out = pl.pallas_call(
        kernel,
        out_shape=jax.ShapeDtypeStruct((n, cout_p), out_dtype),
        grid_spec=pltpu.PrefetchScalarGridSpec(
            num_scalar_prefetch=0,
            grid=(grid_m, grid_k),
            in_specs=[
                pl.BlockSpec((tile_m, tile_k), lambda i, k: (i, k)),   # x tile
                pl.BlockSpec((tile_k, cout_p), lambda i, k: (k, 0)),   # weight chunk
                pl.BlockSpec((1, cout_p), lambda i, k: (0, 0)),        # bias
                pl.BlockSpec((1, cout_p), lambda i, k: (0, 0)),        # ln gamma
                pl.BlockSpec((1, cout_p), lambda i, k: (0, 0)),        # ln beta
            ],
            out_specs=pl.BlockSpec((tile_m, cout_p), lambda i, k: (i, 0)),
            scratch_shapes=[pltpu.VMEM((tile_m, cout_p), jnp.float32)],
        ),
        compiler_params=pltpu.CompilerParams(
            dimension_semantics=("parallel", "arbitrary"),
            vmem_limit_bytes=vmem_limit),
        cost_estimate=cost,
    )(x_in, w_in, b_in, g_in, bt_in)

    if cout_p != cout:
        out = out[:, :cout]
    return out.reshape(*orig_shape[:-1], cout)


def mlp_block_ref(x, w_t, b, gamma, beta):
    y = jnp.dot(x, w_t) + b
    mean = jnp.mean(y, axis=-1, keepdims=True)
    var = jnp.mean((y - mean) ** 2, axis=-1, keepdims=True)
    y = (y - mean) * jax.lax.rsqrt(var + 1e-5)
    y = y * gamma + beta
    return jnp.maximum(y, 0.0)


if __name__ == "__main__":
    in_channels, out_channels = 32, 32
    batch, seq = 2, 8

    key = jax.random.PRNGKey(0)
    kx, kw, kb = jax.random.split(key, 3)

    # x: [*, in_channels] = [batch, seq, in_channels]
    x = jax.random.normal(kx, (batch, seq, in_channels), dtype=jnp.float32)

    # Deterministic synthetic parameters (shapes per nn.Linear / nn.LayerNorm).
    w_bound = (6.0 / (in_channels * out_channels)) ** 0.5
    w = jax.random.uniform(kw, (out_channels, in_channels),
                           minval=-w_bound, maxval=w_bound, dtype=jnp.float32)
    w_t = w.T  # [in, out] for the kernel
    b = jnp.zeros((out_channels,), dtype=jnp.float32)
    gamma = jnp.ones((out_channels,), dtype=jnp.float32)
    beta = jnp.zeros((out_channels,), dtype=jnp.float32)

    ref = mlp_block_ref(x, w_t, b, gamma, beta)

    # Default path: bf16 MXU operands, f32 accumulation / LN (looser tolerance).
    out_bf16 = jax.block_until_ready(mlp_block(x, w_t, b, gamma, beta))
    assert out_bf16.shape == (batch, seq, out_channels)
    assert jnp.allclose(out_bf16, ref, atol=5e-2, rtol=5e-2)

    # f32-operand path for a strict numerical check.
    out_f32 = jax.block_until_ready(
        mlp_block(x, w_t, b, gamma, beta, matmul_dtype=jnp.float32))
    assert out_f32.shape == (batch, seq, out_channels)
    assert jnp.allclose(out_f32, ref, atol=1e-4, rtol=1e-4)

    # TODO(synk): dropout (train-mode RNG masking) omitted; identity at inference.
    print("KERNEL_OK")
</pallas_src>

<mosaic_0001>
module attributes {stable_mosaic.version = 11 : i64} {
  func.func @mlp_block_kernel(%arg0: i32, %arg1: i32, %arg2: memref<8x128xbf16, #tpu.memory_space<vmem>>, %arg3: memref<128x128xbf16, #tpu.memory_space<vmem>>, %arg4: memref<1x128xf32, #tpu.memory_space<vmem>>, %arg5: memref<1x128xf32, #tpu.memory_space<vmem>>, %arg6: memref<1x128xf32, #tpu.memory_space<vmem>>, %arg7: memref<8x128xf32, #tpu.memory_space<vmem>>, %arg8: memref<8x128xf32, #tpu.memory_space<vmem>>) attributes {dimension_semantics = [#tpu.dimension_semantics<parallel>, #tpu.dimension_semantics<arbitrary>], iteration_bounds = array<i64: 2, 1>, scalar_prefetch = 0 : i64, scratch_operands = 1 : i64, tpu.core_type = #tpu.core_type<tc>, window_params = [{transform_indices = @transform_0, window_bounds = array<i64: 8, 128>}, {transform_indices = @transform_1, window_bounds = array<i64: 128, 128>}, {pipeline_mode = #tpu.pipeline_mode<synchronous>, transform_indices = @transform_2, window_bounds = array<i64: 1, 128>}, {pipeline_mode = #tpu.pipeline_mode<synchronous>, transform_indices = @transform_3, window_bounds = array<i64: 1, 128>}, {pipeline_mode = #tpu.pipeline_mode<synchronous>, transform_indices = @transform_4, window_bounds = array<i64: 1, 128>}, {transform_indices = @transform_5, window_bounds = array<i64: 8, 128>}]} {
    %c0_i32 = arith.constant 0 : i32
    %0 = arith.cmpi eq, %arg1, %c0_i32 : i32
    %1 = arith.extui %0 : i1 to i32
    %c0_i32_0 = arith.constant 0 : i32
    %2 = arith.cmpi ne, %1, %c0_i32_0 : i32
    scf.if %2 {
      %cst_10 = arith.constant 0.000000e+00 : f32
      %12 = vector.broadcast %cst_10 : f32 to vector<8x128xf32>
      %c0_11 = arith.constant 0 : index
      %c0_12 = arith.constant 0 : index
      %13 = vector.load %arg8[%c0_11, %c0_12] : memref<8x128xf32, #tpu.memory_space<vmem>>, vector<8x128xf32>
      tpu.vector_store %arg8[%c0_11, %c0_12], %12 {strides = array<i32>} : memref<8x128xf32, #tpu.memory_space<vmem>>, vector<8x128xf32>,
    } else {
    }
    %c0 = arith.constant 0 : index
    %c0_1 = arith.constant 0 : index
    %3 = vector.load %arg8[%c0, %c0_1] : memref<8x128xf32, #tpu.memory_space<vmem>>, vector<8x128xf32>
    %c0_2 = arith.constant 0 : index
    %c0_3 = arith.constant 0 : index
    %4 = vector.load %arg2[%c0_2, %c0_3] : memref<8x128xbf16, #tpu.memory_space<vmem>>, vector<8x128xbf16>
    %c0_4 = arith.constant 0 : index
    %c0_5 = arith.constant 0 : index
    %5 = vector.load %arg3[%c0_4, %c0_5] : memref<128x128xbf16, #tpu.memory_space<vmem>>, vector<128x128xbf16>
    %cst = arith.constant dense<0.000000e+00> : vector<8x128xf32>
    %6 = tpu.matmul %4, %5, %cst {dimension_numbers = #tpu.dot_dimension_numbers<[1], [0], [0], [1], [0, 0, 1, 1], [], []>} : vector<8x128xbf16>, vector<128x128xbf16>, vector<8x128xf32> -> vector<8x128xf32>
    %7 = arith.addf %3, %6 : vector<8x128xf32>
    %c0_6 = arith.constant 0 : index
    %c0_7 = arith.constant 0 : index
    %8 = vector.load %arg8[%c0_6, %c0_7] : memref<8x128xf32, #tpu.memory_space<vmem>>, vector<8x128xf32>
    tpu.vector_store %arg8[%c0_6, %c0_7], %7 {strides = array<i32>} : memref<8x128xf32, #tpu.memory_space<vmem>>, vector<8x128xf32>,
    %c0_i32_8 = arith.constant 0 : i32
    %9 = arith.cmpi eq, %arg1, %c0_i32_8 : i32
    %10 = arith.extui %9 : i1 to i32
    %c0_i32_9 = arith.constant 0 : i32
    %11 = arith.cmpi ne, %10, %c0_i32_9 : i32
    scf.if %11 {
      %c0_10 = arith.constant 0 : index
      %c0_11 = arith.constant 0 : index
      %12 = vector.load %arg8[%c0_10, %c0_11] : memref<8x128xf32, #tpu.memory_space<vmem>>, vector<8x128xf32>
      %c0_12 = arith.constant 0 : index
      %c0_13 = arith.constant 0 : index
      %13 = vector.load %arg4[%c0_12, %c0_13] : memref<1x128xf32, #tpu.memory_space<vmem>>, vector<1x128xf32>
      %14 = vector.broadcast %13 : vector<1x128xf32> to vector<8x128xf32>
      %15 = arith.addf %12, %14 : vector<8x128xf32>
      %cst_14 = arith.constant dense<0.000000e+00> : vector<8xf32>
      %16 = vector.multi_reduction <add>, %15, %cst_14 [1] : vector<8x128xf32> to vector<8xf32>
      %17 = vector.shape_cast %16 : vector<8xf32> to vector<8x1xf32>
      %cst_15 = arith.constant 3.125000e-02 : f32
      %18 = vector.broadcast %cst_15 : f32 to vector<8x1xf32>
      %19 = arith.mulf %17, %18 : vector<8x1xf32>
      %20 = vector.broadcast %19 : vector<8x1xf32> to vector<8x128xf32>
      %21 = arith.subf %15, %20 : vector<8x128xf32>
      %22 = tpu.iota {dimensions = array<i32: 1>} : vector<8x128xi32>
      %c32_i32 = arith.constant 32 : i32
      %23 = vector.broadcast %c32_i32 : i32 to vector<8x128xi32>
      %24 = arith.cmpi slt, %22, %23 : vector<8x128xi32>
      %cst_16 = arith.constant 0.000000e+00 : f32
      %25 = vector.broadcast %cst_16 : f32 to vector<8x128xf32>
      %26 = arith.select %24, %21, %25 : vector<8x128xi1>, vector<8x128xf32>
      %27 = arith.mulf %26, %26 : vector<8x128xf32>
      %cst_17 = arith.constant dense<0.000000e+00> : vector<8xf32>
      %28 = vector.multi_reduction <add>, %27, %cst_17 [1] : vector<8x128xf32> to vector<8xf32>
      %29 = vector.shape_cast %28 : vector<8xf32> to vector<8x1xf32>
      %cst_18 = arith.constant 3.125000e-02 : f32
      %30 = vector.broadcast %cst_18 : f32 to vector<8x1xf32>
      %31 = arith.mulf %29, %30 : vector<8x1xf32>
      %cst_19 = arith.constant 9.99999974E-6 : f32
      %32 = vector.broadcast %cst_19 : f32 to vector<8x1xf32>
      %33 = arith.addf %31, %32 : vector<8x1xf32>
      %34 = math.rsqrt %33 : vector<8x1xf32>
      %35 = vector.broadcast %34 : vector<8x1xf32> to vector<8x128xf32>
      %36 = arith.mulf %26, %35 : vector<8x128xf32>
      %c0_20 = arith.constant 0 : index
      %c0_21 = arith.constant 0 : index
      %37 = vector.load %arg5[%c0_20, %c0_21] : memref<1x128xf32, #tpu.memory_space<vmem>>, vector<1x128xf32>
      %38 = vector.broadcast %37 : vector<1x128xf32> to vector<8x128xf32>
      %39 = arith.mulf %36, %38 : vector<8x128xf32>
      %c0_22 = arith.constant 0 : index
      %c0_23 = arith.constant 0 : index
      %40 = vector.load %arg6[%c0_22, %c0_23] : memref<1x128xf32, #tpu.memory_space<vmem>>, vector<1x128xf32>
      %41 = vector.broadcast %40 : vector<1x128xf32> to vector<8x128xf32>
      %42 = arith.addf %39, %41 : vector<8x128xf32>
      %cst_24 = arith.constant 0.000000e+00 : f32
      %43 = vector.broadcast %cst_24 : f32 to vector<8x128xf32>
      %44 = arith.maximumf %42, %43 : vector<8x128xf32>
      %c0_25 = arith.constant 0 : index
      %c0_26 = arith.constant 0 : index
      %45 = vector.load %arg7[%c0_25, %c0_26] : memref<8x128xf32, #tpu.memory_space<vmem>>, vector<8x128xf32>
      tpu.vector_store %arg7[%c0_25, %c0_26], %44 {strides = array<i32>} : memref<8x128xf32, #tpu.memory_space<vmem>>, vector<8x128xf32>,
    } else {
    }
    return
  }
  func.func @transform_0(%arg0: i32, %arg1: i32) -> (i32, i32) {
    %c0_i32 = arith.constant 0 : i32
    return %arg0, %arg1 : i32, i32
  }
  func.func @transform_1(%arg0: i32, %arg1: i32) -> (i32, i32) {
    %c0_i32 = arith.constant 0 : i32
    %c0_i32_0 = arith.constant 0 : i32
    return %arg1, %c0_i32 : i32, i32
  }
  func.func @transform_2(%arg0: i32, %arg1: i32) -> (i32, i32) {
    %c0_i32 = arith.constant 0 : i32
    %c0_i32_0 = arith.constant 0 : i32
    %c0_i32_1 = arith.constant 0 : i32
    return %c0_i32, %c0_i32_0 : i32, i32
  }
  func.func @transform_3(%arg0: i32, %arg1: i32) -> (i32, i32) {
    %c0_i32 = arith.constant 0 : i32
    %c0_i32_0 = arith.constant 0 : i32
    %c0_i32_1 = arith.constant 0 : i32
    return %c0_i32, %c0_i32_0 : i32, i32
  }
  func.func @transform_4(%arg0: i32, %arg1: i32) -> (i32, i32) {
    %c0_i32 = arith.constant 0 : i32
    %c0_i32_0 = arith.constant 0 : i32
    %c0_i32_1 = arith.constant 0 : i32
    return %c0_i32, %c0_i32_0 : i32, i32
  }
  func.func @transform_5(%arg0: i32, %arg1: i32) -> (i32, i32) {
    %c0_i32 = arith.constant 0 : i32
    %c0_i32_0 = arith.constant 0 : i32
    return %arg0, %c0_i32 : i32, i32
  }
}

</mosaic_0001>

<bundles_post_ra>
// kernel: tpu_custom_call.1
= control target key start
LH: loop header
LB: loop body
LE: loop exit
PB: predicated region body
PF: predicated region fallthrough
CT: control target
= control target key end

     0   :  { %10 = vsyncpa [#allocation4], 0  ;;  %s1095_s0 = inlined_call_operand.hbm [shape: bf16[16,128], index: 0, kind: input, shape index: {}]   ;;  %s1096_s1 = inlined_call_operand.hbm [shape: bf16[128,128], index: 1, kind: input, shape index: {}]   ;;  %s1097_s2 = inlined_call_operand.vmem [shape: f32[1,128], index: 2, kind: input, shape index: {}]   ;;  %s1098_s3 = inlined_call_operand.vmem [shape: f32[1,128], index: 3, kind: input, shape index: {}]   ;;  %s1099_s4 = inlined_call_operand.vmem [shape: f32[1,128], index: 4, kind: input, shape index: {}]   ;;  %s1100_s5 = inlined_call_operand.hbm [shape: f32[16,128], index: 5, kind: output, shape index: {}]  }
   0x1   :  { %12 = vsyncpa [#allocation4 + $0x1], 0 }
   0x2   :  { %13 = vsyncpa [#allocation7], 0 }
   0x3   :  { %14 = vsyncpa [#allocation5], 0 }
   0x4   :  { %16 = vsyncpa [#allocation5 + $0x1], 0  ;;  %s868_s18 = smov 0   ;;  %s870_s19 = smov 0  }
   0x5   :  { %s872_s20 = smov 0   ;;  %s874_s21 = smov 0  }
   0x6   :  { %s876_s22 = smov 0   ;;  %s878_s23 = smov 0  }
   0x7 LB: > { %s543_s24 = sadd.s32 4294967295, %s829_s23   ;;  %s544_s25 = sadd.s32 4294967294, %s829_s23   ;;  %s829_s23 = sphi %s878_s23, %s22_s23   ;;  %s825_s22 = sphi %s876_s22, %s1124_s22   ;;  %s821_s21 = sphi %s874_s21, %s1123_s21   ;;  %s817_s20 = sphi %s872_s20, %s1122_s20   ;;  %s813_s19 = sphi %s870_s19, %s1121_s19   ;;  %s809_s18 = sphi %s868_s18, %s1120_s18  }
   0x8   : > { %p56_p0 = scmp.ne.s32.totalorder %s813_s19, %s809_s18  ;;  %p902_p1 = scmp.eq.s32.totalorder %s543_s24, 0 }
   0x9   : > { %p906_p2 = scmp.eq.s32.totalorder %s543_s24, 1  ;;  %p175_p3 = scmp.eq.s32.totalorder %s544_s25, 1 }
   0xa   : > { %s1105_s26 = scalar_select %p902_p1, 1, 0 }
   0xb   : > { %s1106_s27 = scalar_select %p906_p2, 1, 0 }
   0xc   : > { %p912_p4 = por %p902_p1, %p56_p0  ;;  %p545_p5 = scmp.ge.s32.totalorder %s829_s23, 1 }
   0xd   : > { %p917_p6 = por %p175_p3, %p56_p0  ;;  %p182_p7 = scmp.lt.s32.totalorder %s829_s23, 3 }
   0xe   : > { %s1107_s28 = scalar_select %p912_p4, 1, 0 }
   0xf   : > { %s1108_s29 = scalar_select %p917_p6, 1, 0 }
  0x10   : > { %p922_p8 = pnand %p545_p5, %p182_p7  ;;  %s831_s6 = smov [#allocation6]  }
  0x11   : > { %s197_s7 = sshll.u32 %s831_s6, 4  ;;  %s34_s9 = sadd.s32 1, %s825_s22  ;;  %s198_s7 = int_to_ptr.vmem [resolvable:$true] %s197_s7 }
  0x12   : > { %s1109_s30 = scalar_select %p922_p8, 1, 0 }
  0x13   : > { %p606_p9 = pneg %p922_p8  ;;  %s685_s12 = scalar_lea.hbm %s1096_s1, 1024 }
  0x14   : > { %p686_p12 = scmp.ne.s32.totalorder %s1096_s1, %s685_s12  ;;  %p692_p5 = scmp.lt.u32.totalorder %s685_s12, %s1096_s1 }
  0x15   : > { %p931_p11 = pnand %p606_p9, %p902_p1 }
  0x17   : > { %p687_p13 = pneg %p931_p11 }
  0x19   : > { %p688_p0 = pnand %p687_p13, %p686_p12 }
  0x1b   : > { %p689_p3 = pneg %p688_p0 }
  0x1d   : > { %p694_p7 = pnand %p692_p5, %p689_p3 }
  0x1f   : > { %697 = shalt.err (!%p694_p7)
}
  0x20   : > { %s698_s17 = scalar_lea.vmem %s198_s7, 1024  ;;  %p706_p1 = scmp.lt.s32.totalorder %s198_s7, %s198_s7 }
  0x21   : > { %p699_p9 = scmp.ne.s32.totalorder %s198_s7, %s698_s17  ;;  %p707_p4 = scmp.lt.s32.totalorder %s698_s17, %s698_s17 }
  0x23   : > { %p701_p10 = pnand %p699_p9, %p687_p13  ;;  %p708_p8 = por %p707_p4, %p706_p1 }
  0x25   : > { %p702_p6 = pneg %p701_p10 }
  0x27   : > { %p709_p2 = pnand %p708_p8, %p702_p6 }
  0x29   : > { %712 = shalt.err (!%p709_p2)
}
  0x2a   : > { %s832_s24 = smov 64   ;;  %s833_s25 = smov 4  }
  0x2b   : > { %609 = dma.hbm_to_vmem [thread:$0]  (!%p931_p11), %s1096_s1, 1024, %s198_s7, [#allocation7], %s832_s24, %s832_s24, %s833_s25  }
  0x2c   : > { %p36_p1 = scmp.ge.s32.totalorder %s34_s9, 2  ;;  %s43_s11 = sadd.s32 1, %s817_s20 }
  0x2d   : > { %p50_p2 = scmp.ne.s32.totalorder %s817_s20, %s813_s19  ;;  %p51_p4 = scmp.eq.s32.totalorder %s829_s23, 0 }
  0x2e   : > { %s1126_s9 = smov (%p36_p1, %s34_s9), 0  ;;  %p1112_p8 = scmp.ne.s32.totalorder %s1106_s27, 0 }
  0x2f   : > { %p958_p6 = por %p51_p4, %p50_p2  ;;  %s38_s8 = ssub.s32 %s825_s22, %s1126_s9 }
  0x30   : > { %p964_p10 = por %p1112_p8, %p50_p2  ;;  %p619_p12 = scmp.lt.s32.totalorder %s829_s23, 2 }
  0x31   : > { %p41_p11 = scmp.eq.s32.totalorder %s38_s8, 0  ;;  %s220_s7 = sand.u32 1, %s817_s20  }
  0x32   : > { %s548_s14 = sshll.u32 %s220_s7, 2  ;;  %s549_s16 = sshll.u32 %s825_s22, 6 }
  0x33   : > { %s973_s15 = scalar_select %p41_p11, %s817_s20, %s43_s11  }
  0x34   : > { %s979_s25 = scalar_lea.hbm %s1095_s0, %s549_s16  ;;  %s224_s27 = scalar_lea.vmem [#allocation3], %s548_s14 }
  0x35   : > { %s232_s6 = sshll.u32 %s224_s27, 4  ;;  %p985_p13 = pnand %p619_p12, %p958_p6  ;;  %s981_s6 = int_to_ptr.vmem [resolvable:$true] %s232_s6 }
  0x36   : > { %s221_s11 = scalar_lea.sflag [#allocation4], %s220_s7  ;;  %s713_s8 = scalar_lea.hbm %s979_s25, 64 }
  0x37   : > { %p714_p0 = scmp.ne.s32.totalorder %s979_s25, %s713_s8  ;;  %p715_p3 = pneg %p985_p13 }
  0x38   : > { %s718_s17 = scalar_lea.hbm %s1095_s0, 128  ;;  %p719_p9 = scmp.lt.u32.totalorder %s979_s25, %s1095_s0 }
  0x39   : > { %p716_p5 = pnand %p715_p3, %p714_p0  ;;  %p720_p1 = scmp.lt.u32.totalorder %s718_s17, %s713_s8 }
  0x3a   : > { %p722_p4 = scmp.lt.u32.totalorder %s713_s8, %s979_s25 }
  0x3b   : > { %p717_p7 = pneg %p716_p5  ;;  %p721_p2 = por %p720_p1, %p719_p9 }
  0x3d   : > { %p723_p6 = por %p722_p4, %p721_p2 }
  0x3f   : > { %p724_p8 = pnand %p723_p6, %p717_p7 }
  0x41   : > { %727 = shalt.err (!%p724_p8)
}
  0x42   : > { %s728_s7 = scalar_lea.vmem %s981_s6, 64  ;;  %s834_s27 = smov [#allocation3]  }
  0x43   : > { %p729_p12 = scmp.ne.s32.totalorder %s981_s6, %s728_s7  ;;  %s733_s14 = sshll.u32 %s834_s27, 4  ;;  %s734_s14 = int_to_ptr.vmem [resolvable:$false] %s733_s14 }
  0x44   : > { %s735_s16 = scalar_lea.vmem %s734_s14, 128  ;;  %p736_p5 = scmp.lt.s32.totalorder %s981_s6, %s734_s14 }
  0x45   : > { %p731_p11 = pnand %p729_p12, %p715_p3  ;;  %p737_p9 = scmp.lt.s32.totalorder %s735_s16, %s728_s7 }
  0x47   : > { %p732_p0 = pneg %p731_p11  ;;  %p738_p1 = por %p737_p9, %p736_p5 }
  0x49   : > { %p739_p2 = pnand %p738_p1, %p732_p0 }
  0x4b   : > { %742 = shalt.err (!%p739_p2)
}
  0x4c   : > { %613 = dma.hbm_to_vmem [thread:$0]  (!%p985_p13), %s979_s25, 64, %s981_s6, %s221_s11  }
  0x4d   : > { %p1115_p7 = scmp.ne.s32.totalorder %s1109_s30, 0 }
  0x4e   : > { %s1017_s8 = sand.u32 (!%p1115_p7), 1, %s813_s19   ;;  %p1116_p3 = scmp.ne.s32.totalorder (!%p1115_p7), %s1107_s28, 0 }
  0x4f   : > { %241 = sbr.rel (%p1115_p7) target bundleno = 665 (0x299), region = 40  ;;  %s551_s17 = sshll.u32 (!%p1115_p7), %s1017_s8, 2 }
  0x50   : > { %s244_s12 = scalar_lea.sflag (!%p1115_p7), [#allocation4], %s1017_s8  ;;  %s1021_s24 = scalar_lea.vmem (!%p1115_p7), [#allocation3], %s551_s17 }
  0x56   : > { %796 = dma.done.wait (%p1116_p3), %s244_s12, 64  }
  0x57   : > { %798 = vsyncadd (%p1116_p3), %s244_s12, 4294967232  ;;  %p1117_p13 = scmp.ne.s32.totalorder %s1105_s26, 0 }
  0x59   : > { %800 = dma.done.wait (%p1117_p13), [#allocation7], 1024  }
  0x5a   : > { %802 = vsyncadd (%p1117_p13), [#allocation7], 4294966272  ;;  %v835_v0 = vmov 0.0   ;;  %vm836_vm0 = vmmov 0   ;;  %v675_v1 = vld [vmem:[#allocation6] sm:$0xff]   ;;  %v676_v2 = vld [vmem:[#allocation6 + $0x8] sm:$0xff]   ;;  %v409_v16 = vlaneseq }
  0x5b   : > { %578 = vmatprep.subr.bf16.mxu0 %v835_v0  ;;  %594 = vmatprep.mubr.msk.bf16.mxu0 %vm836_vm0, %v835_v0  ;;  %v677_v3 = vld [vmem:[#allocation6 + $0x10] sm:$0xff]   ;;  %v678_v4 = vld [vmem:[#allocation6 + $0x18] sm:$0xff]   ;;  %v679_v5 = vld [vmem:[#allocation6 + $0x20] sm:$0xff]   ;;  %s553_s30 = sshll.u32 %s1017_s8, 3  ;;  %s566_s7 = sshll.u32 %s821_s21, 7 }
  0x5c   : > { %579 = vmatpush3.bf16.msra.mxu0 %v675_v1  ;;  %v680_v6 = vld [vmem:[#allocation6 + $0x28] sm:$0xff]   ;;  %v681_v7 = vld [vmem:[#allocation6 + $0x30] sm:$0xff]   ;;  %v682_v8 = vld [vmem:[#allocation6 + $0x38] sm:$0xff]   ;;  %v410_v17 = vand.u32 127, %v409_v16  ;;  %s277_s27 = scalar_lea.vmem [#allocation8], %s553_s30  ;;  %s1046_s12 = scalar_lea.hbm %s1100_s5, %s566_s7 }
  0x5d   : > { %580 = vmatprep.subr.bf16.mxu0 %v835_v0  ;;  %v286_v9 = vld [vmem:[%s1021_s24] sm:$0xf]  ;;  %s452_s14 = sshll.u32 %s277_s27, 4  ;;  %s439_s24 = scalar_lea.sflag [#allocation5], %s1017_s8  ;;  %s1048_s14 = int_to_ptr.vmem [resolvable:$true] %s452_s14 }
  0x5e   : > { %v562_v10 = vld [vmem:[%s1097_s2] ss:$0 sm:$0xff]  ;;  %vm411_vm1 = vcmp.lt.s32.totalorder %v410_v17, 32  ;;  %s743_s26 = scalar_lea.vmem %s1048_s14, 128  ;;  %s837_s21 = smov [#allocation8]  }
  0x5f   : > { %v563_v27 = vld [vmem:[%s1098_s3] ss:$0 sm:$0xff]  ;;  %p744_p4 = scmp.ne.s32.totalorder %s1048_s14, %s743_s26  ;;  %s747_s28 = sshll.u32 %s837_s21, 4  ;;  %s748_s28 = int_to_ptr.vmem [resolvable:$false] %s747_s28 }
  0x60   : > { %581 = vmatpush3.bf16.msra.mxu0 %v676_v2  ;;  %v564_v29 = vld [vmem:[%s1099_s4] ss:$0 sm:$0xff]  ;;  %s749_s30 = scalar_lea.vmem %s748_s28, 256  ;;  %p750_p12 = scmp.lt.s32.totalorder %s1048_s14, %s748_s28 }
  0x61   : > { %582 = vmatprep.subr.bf16.mxu0 %v835_v0  ;;  %p745_p6 = pnand %p744_p4, %p964_p10  ;;  %p751_p11 = scmp.lt.s32.totalorder %s749_s30, %s743_s26 }
  0x63   : > { %p746_p8 = pneg %p745_p6  ;;  %p752_p0 = por %p751_p11, %p750_p12 }
  0x64   : > { %583 = vmatpush3.bf16.msra.mxu0 %v677_v3 }
  0x65   : > { %584 = vmatprep.subr.bf16.mxu0 %v835_v0  ;;  %p753_p5 = pnand %p752_p0, %p746_p8 }
  0x68   : > { %585 = vmatpush3.bf16.msra.mxu0 %v678_v4 }
  0x69   : > { %586 = vmatprep.subr.bf16.mxu0 %v835_v0 }
  0x6c   : > { %587 = vmatpush3.bf16.msra.mxu0 %v679_v5 }
  0x6d   : > { %588 = vmatprep.subr.bf16.mxu0 %v835_v0 }
  0x70   : > { %589 = vmatpush3.bf16.msra.mxu0 %v680_v6 }
  0x71   : > { %590 = vmatprep.subr.bf16.mxu0 %v835_v0 }
  0x74   : > { %591 = vmatpush3.bf16.msra.mxu0 %v681_v7 }
  0x75   : > { %592 = vmatprep.subr.bf16.mxu0 %v835_v0 }
  0x78   : > { %593 = vmatpush3.bf16.msra.mxu0 %v682_v8 }
  0x7b   : > { %595 = vmatmul.mubr.bf16.vlgmr.msra.gmra.mrb[0].mxu0 %v286_v9 }
 0x14e   : > { %v385_v11 = vpop.f32.mrb[0].mxu0 }
 0x14f   : > { %v404_v12 = vadd.f32 %v562_v10, %v385_v11  ;;  %v596_v13 = vpop.f32.mrb[1].mxu0 }
 0x150   : > { %v388_v14 = vpop.f32.mrb[2].mxu0 }
 0x151   : > { %405 = vadd.xlane.f32.xlu0 %v404_v12  ;;  %v597_v15 = vpop.f32.mrb[3].mxu0 }
 0x1de   : > { %v406_v18 = vpop.xlane.xlu0 %405 }
 0x1df   : > { %v407_v19 = vmul.f32 0.03125, %v406_v18 }
 0x1e1   : > { %v408_v20 = vsub.f32 %v404_v12, %v407_v19 }
 0x1e3   : > { %v412_v21 = vsel %vm411_vm1, %v408_v20, 0.0 }
 0x1e4   : > { %v413_v22 = vmul.f32 %v412_v21, %v412_v21 }
 0x1e6   : > { %414 = vadd.xlane.f32.xlu0 %v413_v22 }
 0x273   : > { %v415_v23 = vpop.xlane.xlu0 %414 }
 0x274   : > { %v416_v24 = vmul.f32 0.03125, %v415_v23 }
 0x276   : > { %v417_v25 = vadd.f32 1e-05, %v416_v24 }
 0x278   : > { %683 = vrsqrt.f32 %v417_v25 }
 0x282   : > { %v684_v26 = vpop.eup %683 }
 0x283   : > { %v419_v28 = vmul.f32 %v684_v26, %v412_v21 }
 0x285   : > { %v427_v30 = vmul.f32 %v563_v27, %v419_v28 }
 0x287   : > { %v435_v31 = vadd.f32 %v564_v29, %v427_v30 }
 0x289   : > { %v436_v32 = vmax.f32 %v435_v31, 0.0 }
 0x28b   : > { %437 = vst [vmem:[%s277_s27] sm:$0xff] %v436_v32 }
 0x28c   : > { %756 = shalt.err (!%p753_p5)
}
 0x28d   : > { %s757_s8 = scalar_lea.hbm %s1046_s12, 128  ;;  %s761_s10 = scalar_lea.hbm %s1100_s5, 256 }
 0x28e   : > { %p758_p9 = scmp.ne.s32.totalorder %s1046_s12, %s757_s8  ;;  %p762_p7 = scmp.lt.u32.totalorder %s1046_s12, %s1100_s5 }
 0x28f   : > { %p763_p3 = scmp.lt.u32.totalorder %s761_s10, %s757_s8  ;;  %p765_p4 = scmp.lt.u32.totalorder %s757_s8, %s1046_s12 }
 0x290   : > { %p759_p1 = pnand %p758_p9, %p964_p10 }
 0x291   : > { %p764_p13 = por %p763_p3, %p762_p7 }
 0x292   : > { %p760_p2 = pneg %p759_p1 }
 0x293   : > { %p766_p6 = por %p765_p4, %p764_p13 }
 0x295   : > { %p767_p8 = pnand %p766_p6, %p760_p2 }
 0x297   : > { %770 = shalt.err (!%p767_p8)
}
 0x298   : > { %604 = dma.vmem_to_hbm [thread:$0]  (%p964_p10), %s1048_s14, 128, %s1046_s12, %s439_s24  }
 0x299 PF: > { %s464_s27 = sand.u32 1, %s809_s18   ;;  %p1118_p12 = scmp.ne.s32.totalorder %s1108_s29, 0 }
 0x29a   : > { %p1119_p11 = scmp.ge.s32.totalorder %s829_s23, 2  ;;  %s465_s16 = scalar_lea.sflag [#allocation5], %s464_s27 }
 0x29c   : > { %p615_p0 = pnand %p1119_p11, %p1118_p12 }
 0x29e   : > { %804 = dma.done.wait (!%p615_p0), %s465_s16, 128  }
 0x29f   : > { %806 = vsyncadd (!%p615_p0), %s465_s16, 4294967168  ;;  %s22_s23 = sadd.s32 1, %s829_s23   ;;  %s1120_s18 = smov %s813_s19 }
 0x2a0   : > { %p19_p5 = scmp.ge.s32.totalorder %s22_s23, 4   ;;  %s1121_s19 = smov %s817_s20 }
 0x2a1   : > { %s1122_s20 = smov %s973_s15  ;;  %s1123_s21 = smov %s825_s22 }
 0x2a2   : > { %s1124_s22 = smov %s1126_s9  ;;  %21 = sbr.rel (!%p19_p5) target bundleno = 7 (0x7), region = 98 }
 0x2a9   :  { %470 = vsyncpa [#allocation4], 1 }
 0x2aa   :  { %472 = vsyncpa [#allocation4 + $0x1], 1 }
 0x2ab   :  { %473 = vsyncpa [#allocation7], 1 }
 0x2ac   :  { %474 = vsyncpa [#allocation5], 1 }
 0x2ad   :  { %476 = vsyncpa [#allocation5 + $0x1], 1 }

</bundles_post_ra>
